<compile_context>
chip_gen: v7x
topology: tpu7x:2x2x1
jax: 0.10.0
libtpu: 0.0.40
codegen_flags: <defaults>
</compile_context>

<pallas_src>
import jax
import jax.numpy as jnp
from jax.experimental import pallas as pl
from jax.experimental.pallas import tpu as pltpu


LANE = 128
SUBLANE = 8


def _round_up(x, m):
    return ((x + m - 1) // m) * m


def _pad2d(a, rows, cols):
    r, c = a.shape
    return jnp.pad(a, ((0, rows - r), (0, cols - c)))


def predictor_kernel(x_ref, w1_ref, b1_ref, w2_ref, b2_ref, o_ref):
    # Feature extractor: Linear + ReLU. bf16 operands -> MXU, f32 accumulate,
    # epilogue (bias add + ReLU) in f32.
    h = jnp.dot(x_ref[...], w1_ref[...], preferred_element_type=jnp.float32)
    h = jnp.maximum(h + b1_ref[...], 0.0)
    # Prediction layer: Linear + ReLU (cast h back to bf16 for the MXU).
    y = jnp.dot(h.astype(jnp.bfloat16), w2_ref[...],
                preferred_element_type=jnp.float32)
    o_ref[...] = jnp.maximum(y + b2_ref[...], 0.0)


def predictor_forward(x, w1, b1, w2, b2, *, batch_tile=256):
    """Fused Predictor forward pass on TPU via Pallas.

    x  : (B, D_obs)  float32   observation batch
    w1 : (D_obs, F)  float32   feature_extractor weight, stored (in, out)
    b1 : (F,)        float32
    w2 : (F, T)      float32   pred_layer weight, stored (in, out)
    b2 : (T,)        float32
    returns (B, T) float32
    """
    B, D = x.shape
    D_in, F = w1.shape
    F_in, T = w2.shape
    assert D_in == D and F_in == F

    # Pad every matmul dim to full 128-lane width (numerically exact with
    # zero padding), and the batch to a whole number of tiles.
    Dp = _round_up(D, LANE)
    Fp = _round_up(F, LANE)
    Tp = _round_up(T, LANE)
    # Cap the compute tile at `batch_tile` (<=256 keeps `h` off the spill path)
    # while still accepting tiny / ragged batches.
    tb = min(batch_tile, _round_up(B, SUBLANE))
    Bp = _round_up(B, tb)

    xp = _pad2d(x, Bp, Dp).astype(jnp.bfloat16)
    w1p = _pad2d(w1, Dp, Fp).astype(jnp.bfloat16)
    w2p = _pad2d(w2, Fp, Tp).astype(jnp.bfloat16)
    b1p = _pad2d(b1.reshape(1, -1).astype(jnp.float32), 1, Fp)
    b2p = _pad2d(b2.reshape(1, -1).astype(jnp.float32), 1, Tp)

    # VMEM budget (bytes): streamed x/out are double-buffered by the pipeline,
    # resident weights/biases are single-buffered (pl.Buffered(1)).
    vmem_need = (
        2 * tb * Dp * 2            # x stream, bf16, double-buffered
        + 2 * tb * Tp * 4          # out stream, f32, double-buffered
        + (Dp * Fp + Fp * Tp) * 2  # W1, W2 resident, bf16, single-buffered
        + (Fp + Tp) * 4            # b1, b2 resident, f32
        + tb * Fp * 4              # fused intermediate h (f32), upper bound
    )
    vmem_limit = 32 * 1024 * 1024  # fits the default scoped limit on v6e/v7x
    assert vmem_need < vmem_limit, (
        f"VMEM budget {vmem_need} B exceeds {vmem_limit} B; shrink batch_tile "
        "or split the contraction dim over a reduction grid axis.")

    resident = pl.Buffered(1)  # block index never changes -> no double buffer
    grid = (Bp // tb,)

    out = pl.pallas_call(
        predictor_kernel,
        out_shape=jax.ShapeDtypeStruct((Bp, Tp), jnp.float32),
        grid_spec=pltpu.PrefetchScalarGridSpec(
            num_scalar_prefetch=0,
            grid=grid,
            in_specs=[
                pl.BlockSpec((tb, Dp), lambda i: (i, 0)),                         # x tile (streamed)
                pl.BlockSpec((Dp, Fp), lambda i: (0, 0), pipeline_mode=resident),  # W1 resident
                pl.BlockSpec((1, Fp), lambda i: (0, 0), pipeline_mode=resident),   # b1 resident
                pl.BlockSpec((Fp, Tp), lambda i: (0, 0), pipeline_mode=resident),  # W2 resident
                pl.BlockSpec((1, Tp), lambda i: (0, 0), pipeline_mode=resident),   # b2 resident
            ],
            out_specs=pl.BlockSpec((tb, Tp), lambda i: (i, 0)),                    # lane-dense out
        ),
        compiler_params=pltpu.CompilerParams(
            dimension_semantics=("parallel",),  # batch tiles shard across TCs (v7x)
            vmem_limit_bytes=vmem_limit,
        ),
    )(xp, w1p, b1p, w2p, b2p)

    # Strip batch / lane padding.
    return out[:B, :T]


def init_linear(key, fan_in, fan_out):
    """Deterministic PyTorch-style Linear init, stored as (in, out) + (out,)."""
    kw, kb = jax.random.split(key)
    bound = 1.0 / (fan_in ** 0.5)
    w = jax.random.uniform(kw, (fan_in, fan_out), jnp.float32, -bound, bound)
    b = jax.random.uniform(kb, (fan_out,), jnp.float32, -bound, bound)
    return w, b


if __name__ == "__main__":
    # Small but multi-tile shapes: ragged batch of 500 observations (dim 32),
    # model_features=128, num_targets=8 -> grid of 2 batch tiles (exercises
    # pipelining, megacore sharding on v7x, and the pad-and-slice ragged path).
    B, D_OBS, FEATURES, TARGETS = 500, 32, 128, 8

    key = jax.random.PRNGKey(0)
    k_x, k_fe, k_pred = jax.random.split(key, 3)

    x = jax.random.normal(k_x, (B, D_OBS), jnp.float32)
    w1, b1 = init_linear(k_fe, D_OBS, FEATURES)      # feature_extractor
    w2, b2 = init_linear(k_pred, FEATURES, TARGETS)  # pred_layer

    out = predictor_forward(x, w1, b1, w2, b2)
    out = jax.block_until_ready(out)
    assert out.shape == (B, TARGETS)

    # Reference 1: same bf16-operand / f32-accumulate arithmetic in pure JAX.
    xb, w1b, w2b = (a.astype(jnp.bfloat16) for a in (x, w1, w2))
    ref_h = jnp.maximum(
        jnp.dot(xb, w1b, preferred_element_type=jnp.float32) + b1[None, :], 0.0)
    ref_bf16 = jnp.maximum(
        jnp.dot(ref_h.astype(jnp.bfloat16), w2b,
                preferred_element_type=jnp.float32) + b2[None, :], 0.0)
    assert jnp.allclose(out, ref_bf16, atol=1e-3, rtol=1e-3)

    # Reference 2: full-f32 math (looser tolerance because of bf16 MXU inputs).
    ref_f32 = jnp.maximum(
        jnp.maximum(x @ w1 + b1[None, :], 0.0) @ w2 + b2[None, :], 0.0)
    assert jnp.allclose(out, ref_f32, atol=3e-2, rtol=3e-2)

    print("KERNEL_OK")
</pallas_src>

<mosaic_0001>
module attributes {stable_mosaic.version = 11 : i64} {
  func.func @predictor_kernel(%arg0: i32, %arg1: memref<256x128xbf16, #tpu.memory_space<vmem>>, %arg2: memref<128x128xbf16, #tpu.memory_space<vmem>>, %arg3: memref<1x128xf32, #tpu.memory_space<vmem>>, %arg4: memref<128x128xbf16, #tpu.memory_space<vmem>>, %arg5: memref<1x128xf32, #tpu.memory_space<vmem>>, %arg6: memref<256x128xf32, #tpu.memory_space<vmem>>) attributes {dimension_semantics = [#tpu.dimension_semantics<parallel>], iteration_bounds = array<i64: 2>, scalar_prefetch = 0 : i64, scratch_operands = 0 : i64, tpu.core_type = #tpu.core_type<tc>, window_params = [{transform_indices = @transform_0, window_bounds = array<i64: 256, 128>}, {pipeline_mode = #tpu.pipeline_mode<synchronous>, transform_indices = @transform_1, window_bounds = array<i64: 128, 128>}, {pipeline_mode = #tpu.pipeline_mode<synchronous>, transform_indices = @transform_2, window_bounds = array<i64: 1, 128>}, {pipeline_mode = #tpu.pipeline_mode<synchronous>, transform_indices = @transform_3, window_bounds = array<i64: 128, 128>}, {pipeline_mode = #tpu.pipeline_mode<synchronous>, transform_indices = @transform_4, window_bounds = array<i64: 1, 128>}, {transform_indices = @transform_5, window_bounds = array<i64: 256, 128>}]} {
    %c0 = arith.constant 0 : index
    %c0_0 = arith.constant 0 : index
    %0 = vector.load %arg1[%c0, %c0_0] : memref<256x128xbf16, #tpu.memory_space<vmem>>, vector<256x128xbf16>
    %c0_1 = arith.constant 0 : index
    %c0_2 = arith.constant 0 : index
    %1 = vector.load %arg2[%c0_1, %c0_2] : memref<128x128xbf16, #tpu.memory_space<vmem>>, vector<128x128xbf16>
    %cst = arith.constant dense<0.000000e+00> : vector<256x128xf32>
    %2 = tpu.matmul %0, %1, %cst {dimension_numbers = #tpu.dot_dimension_numbers<[1], [0], [0], [1], [0, 0, 1, 1], [], []>} : vector<256x128xbf16>, vector<128x128xbf16>, vector<256x128xf32> -> vector<256x128xf32>
    %c0_3 = arith.constant 0 : index
    %c0_4 = arith.constant 0 : index
    %3 = vector.load %arg3[%c0_3, %c0_4] : memref<1x128xf32, #tpu.memory_space<vmem>>, vector<1x128xf32>
    %4 = vector.broadcast %3 : vector<1x128xf32> to vector<256x128xf32>
    %5 = arith.addf %2, %4 : vector<256x128xf32>
    %cst_5 = arith.constant 0.000000e+00 : f32
    %6 = vector.broadcast %cst_5 : f32 to vector<256x128xf32>
    %7 = arith.maximumf %5, %6 : vector<256x128xf32>
    %8 = arith.truncf %7 : vector<256x128xf32> to vector<256x128xbf16>
    %c0_6 = arith.constant 0 : index
    %c0_7 = arith.constant 0 : index
    %9 = vector.load %arg4[%c0_6, %c0_7] : memref<128x128xbf16, #tpu.memory_space<vmem>>, vector<128x128xbf16>
    %cst_8 = arith.constant dense<0.000000e+00> : vector<256x128xf32>
    %10 = tpu.matmul %8, %9, %cst_8 {dimension_numbers = #tpu.dot_dimension_numbers<[1], [0], [0], [1], [0, 0, 1, 1], [], []>} : vector<256x128xbf16>, vector<128x128xbf16>, vector<256x128xf32> -> vector<256x128xf32>
    %c0_9 = arith.constant 0 : index
    %c0_10 = arith.constant 0 : index
    %11 = vector.load %arg5[%c0_9, %c0_10] : memref<1x128xf32, #tpu.memory_space<vmem>>, vector<1x128xf32>
    %12 = vector.broadcast %11 : vector<1x128xf32> to vector<256x128xf32>
    %13 = arith.addf %10, %12 : vector<256x128xf32>
    %cst_11 = arith.constant 0.000000e+00 : f32
    %14 = vector.broadcast %cst_11 : f32 to vector<256x128xf32>
    %15 = arith.maximumf %13, %14 : vector<256x128xf32>
    %c0_12 = arith.constant 0 : index
    %c0_13 = arith.constant 0 : index
    %16 = vector.load %arg6[%c0_12, %c0_13] : memref<256x128xf32, #tpu.memory_space<vmem>>, vector<256x128xf32>
    tpu.vector_store %arg6[%c0_12, %c0_13], %15 {strides = array<i32>} : memref<256x128xf32, #tpu.memory_space<vmem>>, vector<256x128xf32>,
    return
  }
  func.func @transform_0(%arg0: i32) -> (i32, i32) {
    %c0_i32 = arith.constant 0 : i32
    %c0_i32_0 = arith.constant 0 : i32
    return %arg0, %c0_i32 : i32, i32
  }
  func.func @transform_1(%arg0: i32) -> (i32, i32) {
    %c0_i32 = arith.constant 0 : i32
    %c0_i32_0 = arith.constant 0 : i32
    %c0_i32_1 = arith.constant 0 : i32
    return %c0_i32, %c0_i32_0 : i32, i32
  }
  func.func @transform_2(%arg0: i32) -> (i32, i32) {
    %c0_i32 = arith.constant 0 : i32
    %c0_i32_0 = arith.constant 0 : i32
    %c0_i32_1 = arith.constant 0 : i32
    return %c0_i32, %c0_i32_0 : i32, i32
  }
  func.func @transform_3(%arg0: i32) -> (i32, i32) {
    %c0_i32 = arith.constant 0 : i32
    %c0_i32_0 = arith.constant 0 : i32
    %c0_i32_1 = arith.constant 0 : i32
    return %c0_i32, %c0_i32_0 : i32, i32
  }
  func.func @transform_4(%arg0: i32) -> (i32, i32) {
    %c0_i32 = arith.constant 0 : i32
    %c0_i32_0 = arith.constant 0 : i32
    %c0_i32_1 = arith.constant 0 : i32
    return %c0_i32, %c0_i32_0 : i32, i32
  }
  func.func @transform_5(%arg0: i32) -> (i32, i32) {
    %c0_i32 = arith.constant 0 : i32
    %c0_i32_0 = arith.constant 0 : i32
    return %arg0, %c0_i32 : i32, i32
  }
}

</mosaic_0001>

<bundles_post_ra>
// kernel: tpu_custom_call.1
= control target key start
LH: loop header
LB: loop body
LE: loop exit
PB: predicated region body
PF: predicated region fallthrough
CT: control target
= control target key end

     0   :  { %10 = vsyncpa [#allocation3], 0  ;;  %s1953_s0 = inlined_call_operand.hbm [shape: bf16[512,128], index: 0, kind: input, shape index: {}]   ;;  %s1954_s1 = inlined_call_operand.hbm [shape: bf16[128,128], index: 1, kind: input, shape index: {}]   ;;  %s1955_s2 = inlined_call_operand.vmem [shape: f32[1,128], index: 2, kind: input, shape index: {}]   ;;  %s1956_s3 = inlined_call_operand.hbm [shape: bf16[128,128], index: 3, kind: input, shape index: {}]   ;;  %s1957_s4 = inlined_call_operand.vmem [shape: f32[1,128], index: 4, kind: input, shape index: {}]   ;;  %s1958_s5 = inlined_call_operand.hbm [shape: f32[512,128], index: 5, kind: output, shape index: {}]  }
   0x1   :  { %12 = vsyncpa [#allocation3 + $0x1], 0 }
   0x2   :  { %13 = vsyncpa [#allocation6], 0 }
   0x3   :  { %14 = vsyncpa [#allocation4], 0 }
   0x4   :  { %16 = vsyncpa [#allocation4 + $0x1], 0  ;;  %s1582_s18 = smov 0   ;;  %s1584_s19 = smov 0  }
   0x5   :  { %s1586_s20 = smov 0   ;;  %s1588_s21 = smov 0  }
   0x6 LB: > { %s1603_s22 = sadd.s32 4294967295, %s1542_s21   ;;  %s1085_s23 = sadd.s32 4294967294, %s1542_s21   ;;  %s1542_s21 = sphi %s1588_s21, %s1978_s21   ;;  %s1538_s20 = sphi %s1586_s20, %s1977_s20   ;;  %s1534_s19 = sphi %s1584_s19, %s1976_s19   ;;  %s1530_s18 = sphi %s1582_s18, %s1975_s18  }
   0x7   : > { %p42_p0 = scmp.ne.s32.totalorder %s1534_s19, %s1530_s18  ;;  %p1959_p1 = scmp.eq.s32.totalorder %s1603_s22, 0 }
   0x8   : > { %p156_p3 = scmp.eq.s32.totalorder %s1085_s23, 1  ;;  %p1086_p5 = scmp.ge.s32.totalorder %s1542_s21, 1 }
   0x9   : > { %p1612_p4 = por %p1959_p1, %p42_p0  ;;  %p163_p7 = scmp.lt.s32.totalorder %s1542_s21, 3 }
   0xa   : > { %p1617_p6 = por %p156_p3, %p42_p0  ;;  %s1544_s27 = smov [#allocation5]  }
   0xb   : > { %s1962_s24 = scalar_select %p1612_p4, 1, 0 }
   0xc   : > { %s1963_s25 = scalar_select %p1617_p6, 1, 0 }
   0xd   : > { %p1622_p8 = pnand %p1086_p5, %p163_p7  ;;  %s175_s28 = sshll.u32 %s1544_s27, 4  ;;  %s1626_s28 = int_to_ptr.vmem [resolvable:$true] %s175_s28 }
   0xe   : > { %s1545_s30 = smov [#allocation7]   ;;  %s1386_s9 = scalar_lea.hbm %s1954_s1, 1024 }
   0xf   : > { %p1295_p9 = pneg %p1622_p8  ;;  %s191_s6 = sshll.u32 %s1545_s30, 4  ;;  %s1637_s6 = int_to_ptr.vmem [resolvable:$true] %s191_s6 }
  0x10   : > { %p1387_p12 = scmp.ne.s32.totalorder %s1954_s1, %s1386_s9  ;;  %p1393_p5 = scmp.lt.u32.totalorder %s1386_s9, %s1954_s1 }
  0x11   : > { %p1633_p11 = pnand %p1295_p9, %p1959_p1 }
  0x13   : > { %p1388_p13 = pneg %p1633_p11 }
  0x15   : > { %p1389_p0 = pnand %p1388_p13, %p1387_p12 }
  0x17   : > { %p1390_p3 = pneg %p1389_p0 }
  0x19   : > { %p1395_p7 = pnand %p1393_p5, %p1390_p3 }
  0x1b   : > { %1398 = shalt.err (!%p1395_p7)
}
  0x1c   : > { %s1399_s14 = scalar_lea.vmem %s1626_s28, 1024  ;;  %p1407_p2 = scmp.lt.s32.totalorder %s1626_s28, %s1626_s28 }
  0x1d   : > { %p1400_p9 = scmp.ne.s32.totalorder %s1626_s28, %s1399_s14  ;;  %p1408_p12 = scmp.lt.s32.totalorder %s1399_s14, %s1399_s14 }
  0x1f   : > { %p1402_p10 = pnand %p1400_p9, %p1388_p13  ;;  %p1409_p0 = por %p1408_p12, %p1407_p2 }
  0x21   : > { %p1403_p1 = pneg %p1402_p10 }
  0x23   : > { %p1410_p6 = pnand %p1409_p0, %p1403_p1 }
  0x25   : > { %1413 = shalt.err (!%p1410_p6)
}
  0x26   : > { %s1546_s15 = smov 64   ;;  %s1547_s16 = smov 4  }
  0x27   : > { %1298 = dma.hbm_to_vmem [thread:$0]  (!%p1633_p11), %s1954_s1, 1024, %s1626_s28, [#allocation6], %s1546_s15, %s1546_s15, %s1547_s16  }
  0x28   : > { %s1414_s7 = scalar_lea.hbm %s1956_s3, 1024 }
  0x29   : > { %p1415_p1 = scmp.ne.s32.totalorder %s1956_s3, %s1414_s7  ;;  %p1421_p10 = scmp.lt.u32.totalorder %s1414_s7, %s1956_s3 }
  0x2b   : > { %p1417_p2 = pnand %p1415_p1, %p1388_p13 }
  0x2d   : > { %p1418_p6 = pneg %p1417_p2 }
  0x2f   : > { %p1423_p3 = pnand %p1421_p10, %p1418_p6 }
  0x31   : > { %1426 = shalt.err (!%p1423_p3)
}
  0x32   : > { %s1427_s28 = scalar_lea.vmem %s1637_s6, 1024  ;;  %p1435_p12 = scmp.lt.s32.totalorder %s1637_s6, %s1637_s6 }
  0x33   : > { %p1428_p5 = scmp.ne.s32.totalorder %s1637_s6, %s1427_s28  ;;  %p1436_p0 = scmp.lt.s32.totalorder %s1427_s28, %s1427_s28 }
  0x35   : > { %p1430_p7 = pnand %p1428_p5, %p1388_p13  ;;  %p1437_p1 = por %p1436_p0, %p1435_p12 }
  0x37   : > { %p1431_p9 = pneg %p1430_p7 }
  0x39   : > { %p1438_p2 = pnand %p1437_p1, %p1431_p9 }
  0x3b   : > { %1441 = shalt.err (!%p1438_p2)
}
  0x3c   : > { %1301 = dma.hbm_to_vmem [thread:$0]  (!%p1633_p11), %s1956_s3, 1024, %s1637_s6, [#allocation6], %s1546_s15, %s1546_s15, %s1547_s16  }
  0x3d   : > { %s1698_s29 = sadd.s32 1, %s1542_s21   ;;  %s29_s14 = sadd.s32 1, %s1538_s20 }
  0x3e   : > { %s26_s17 = ssub.s32 %s1542_s21, %s1698_s29  ;;  %p36_p13 = scmp.ne.s32.totalorder %s1538_s20, %s1534_s19 }
  0x3f   : > { %p27_p6 = scmp.eq.s32.totalorder %s26_s17, 0  ;;  %p37_p10 = scmp.eq.s32.totalorder %s1542_s21, 0 }
  0x40   : > { %p1966_p3 = scmp.eq.s32.totalorder %s1603_s22, 1  ;;  %p1312_p7 = scmp.lt.s32.totalorder %s1542_s21, 2 }
  0x41   : > { %s1714_s27 = scalar_select %p27_p6, %s1538_s20, %s29_s14  }
  0x42   : > { %p1708_p5 = por %p1966_p3, %p36_p13  ;;  %p38_p9 = por %p37_p10, %p36_p13 }
  0x43   : > { %s208_s30 = sand.u32 1, %s1538_s20   ;;  %s1137_s6 = sshll.u32 %s1542_s21, 11 }
  0x44   : > { %s1967_s23 = scalar_select %p1708_p5, 1, 0 }
  0x45   : > { %s1090_s7 = sshll.u32 %s208_s30, 7  ;;  %s1721_s10 = scalar_lea.hbm %s1953_s0, %s1137_s6 }
  0x46   : > { %s212_s11 = scalar_lea.vmem [#allocation2], %s1090_s7  ;;  %p1725_p11 = pnand %p1312_p7, %p38_p9 }
  0x47   : > { %s219_s28 = sshll.u32 %s212_s11, 4  ;;  %s1729_s13 = scalar_lea.sflag [#allocation3], %s208_s30  ;;  %s1723_s28 = int_to_ptr.vmem [resolvable:$true] %s219_s28 }
  0x48   : > { %s1442_s14 = scalar_lea.hbm %s1721_s10, 2048  ;;  %p1444_p0 = pneg %p1725_p11 }
  0x49   : > { %p1443_p12 = scmp.ne.s32.totalorder %s1721_s10, %s1442_s14  ;;  %s1447_s6 = scalar_lea.hbm %s1953_s0, 4096 }
  0x4a   : > { %p1448_p13 = scmp.lt.u32.totalorder %s1721_s10, %s1953_s0  ;;  %p1449_p6 = scmp.lt.u32.totalorder %s1447_s6, %s1442_s14 }
  0x4b   : > { %p1445_p1 = pnand %p1444_p0, %p1443_p12  ;;  %p1451_p3 = scmp.lt.u32.totalorder %s1442_s14, %s1721_s10 }
  0x4c   : > { %p1450_p10 = por %p1449_p6, %p1448_p13 }
  0x4d   : > { %p1446_p2 = pneg %p1445_p1 }
  0x4e   : > { %p1452_p7 = por %p1451_p3, %p1450_p10 }
  0x50   : > { %p1453_p9 = pnand %p1452_p7, %p1446_p2 }
  0x52   : > { %1456 = shalt.err (!%p1453_p9)
}
  0x53   : > { %s1457_s30 = scalar_lea.vmem %s1723_s28, 2048  ;;  %s1548_s11 = smov [#allocation2]  }
  0x54   : > { %p1458_p12 = scmp.ne.s32.totalorder %s1723_s28, %s1457_s30  ;;  %s1462_s17 = sshll.u32 %s1548_s11, 4  ;;  %s1463_s17 = int_to_ptr.vmem [resolvable:$false] %s1462_s17 }
  0x55   : > { %s1464_s7 = scalar_lea.vmem %s1463_s17, 4096  ;;  %p1465_p4 = scmp.lt.s32.totalorder %s1723_s28, %s1463_s17 }
  0x56   : > { %p1460_p1 = pnand %p1458_p12, %p1444_p0  ;;  %p1466_p13 = scmp.lt.s32.totalorder %s1464_s7, %s1457_s30 }
  0x58   : > { %p1461_p5 = pneg %p1460_p1  ;;  %p1467_p6 = por %p1466_p13, %p1465_p4 }
  0x5a   : > { %p1468_p10 = pnand %p1467_p6, %p1461_p5 }
  0x5c   : > { %1471 = shalt.err (!%p1468_p10)
}
  0x5d   : > { %1305 = dma.hbm_to_vmem [thread:$0]  (!%p1725_p11), %s1721_s10, 2048, %s1723_s28, %s1729_s13, %s1546_s15, %s1546_s15, %s1547_s16  }
  0x5e   : > { %231 = sbr.rel (%p1622_p8) target bundleno = 650 (0x28a), region = 40  ;;  %s1763_s14 = sand.u32 (!%p1622_p8), 1, %s1534_s19  }
  0x5f   : > { %s1094_s6 = sshll.u32 (!%p1622_p8), %s1763_s14, 7  ;;  %s234_s8 = scalar_lea.sflag (!%p1622_p8), [#allocation3], %s1763_s14 }
  0x60   : > { %s1767_s9 = scalar_lea.vmem (!%p1622_p8), [#allocation2], %s1094_s6  ;;  %p1969_p4 = scmp.ne.s32.totalorder (!%p1622_p8), %s1962_s24, 0 }
  0x65   : > { %1517 = dma.done.wait (%p1969_p4), %s234_s8, 2048  }
  0x66   : > { %1519 = vsyncadd (%p1969_p4), %s234_s8, 4294965248  ;;  %p1970_p5 = scmp.eq.s32.totalorder %s1603_s22, 0 }
  0x68   : > { %1521 = dma.done.wait (%p1970_p5), [#allocation6], 2048   ;;  %p1971_p8 = pmov %p1970_p5 }
  0x69   : > { %v1354_v0 = vld [vmem:[#allocation5] sm:$0xff]   ;;  %v1355_v1 = vld [vmem:[#allocation5 + $0x8] sm:$0xff]   ;;  %v1356_v2 = vld [vmem:[#allocation5 + $0x10] sm:$0xff]   ;;  %s1097_s10 = sshll.u32 %s1763_s14, 8  ;;  %s1138_s12 = sshll.u32 %s1603_s22, 12 }
  0x6a   : > { %1523 = vsyncadd (%p1971_p8), [#allocation6], 4294965248  ;;  %1187 = vmatprep.subr.bf16.mxu0 %v1354_v0  ;;  %v1357_v3 = vld [vmem:[#allocation5 + $0x18] sm:$0xff]   ;;  %v1362_v4 = vld [vmem:[%s1767_s9] sm:$0xff]   ;;  %s1840_s28 = scalar_lea.vmem [#allocation8], %s1097_s10  ;;  %s1904_s17 = scalar_lea.hbm %s1958_s5, %s1138_s12 }
  0x6b   : > { %1188 = vmatpush3.bf16.msra.mxu0 %v1354_v0  ;;  %1203 = vmatprep.mubr.bf16.mxu0 %v1362_v4  ;;  %v1358_v5 = vld [vmem:[#allocation5 + $0x20] sm:$0xff]   ;;  %v1359_v6 = vld [vmem:[#allocation5 + $0x28] sm:$0xff]   ;;  %v1360_v7 = vld [vmem:[#allocation5 + $0x30] sm:$0xff]   ;;  %s993_s13 = sshll.u32 %s1840_s28, 4  ;;  %s980_s22 = scalar_lea.sflag [#allocation4], %s1763_s14  ;;  %s1906_s13 = int_to_ptr.vmem [resolvable:$true] %s993_s13 }
  0x6c   : > { %1189 = vmatprep.subr.bf16.mxu0 %v1355_v1  ;;  %v1361_v8 = vld [vmem:[#allocation5 + $0x38] sm:$0xff]   ;;  %v1378_v9 = vld [vmem:[#allocation7] sm:$0xff]   ;;  %v1379_v10 = vld [vmem:[#allocation7 + $0x8] sm:$0xff]   ;;  %s1472_s7 = scalar_lea.vmem %s1906_s13, 4096  ;;  %p1972_p0 = scmp.ne.s32.totalorder %s1967_s23, 0 }
  0x6d   : > { %1235 = vmatprep.subr.bf16.mxu1 %v1378_v9  ;;  %v1380_v11 = vld [vmem:[#allocation7 + $0x10] sm:$0xff]   ;;  %v1363_v12 = vld [vmem:[%s1767_s9 + $0x8] sm:$0xff]   ;;  %v1381_v14 = vld [vmem:[#allocation7 + $0x18] sm:$0xff]   ;;  %p1473_p11 = scmp.ne.s32.totalorder %s1906_s13, %s1472_s7  ;;  %s1549_s6 = smov [#allocation8]  }
  0x6e   : > { %1236 = vmatpush3.bf16.msra.mxu1 %v1378_v9  ;;  %v1364_v13 = vld [vmem:[%s1767_s9 + $0x10] sm:$0xff]   ;;  %v1382_v15 = vld [vmem:[#allocation7 + $0x20] sm:$0xff]   ;;  %v1365_v16 = vld [vmem:[%s1767_s9 + $0x18] sm:$0xff]   ;;  %s1476_s8 = sshll.u32 %s1549_s6, 4  ;;  %s1477_s8 = int_to_ptr.vmem [resolvable:$false] %s1476_s8 }
  0x6f   : > { %1190 = vmatpush3.bf16.msra.mxu0 %v1355_v1  ;;  %1237 = vmatprep.subr.bf16.mxu1 %v1379_v10  ;;  %v1366_v17 = vld [vmem:[%s1767_s9 + $0x20] sm:$0xff]   ;;  %v1383_v18 = vld [vmem:[#allocation7 + $0x28] sm:$0xff]   ;;  %v1368_v20 = vld [vmem:[%s1767_s9 + $0x30] sm:$0xff]   ;;  %p1474_p2 = pnand %p1473_p11, %p1972_p0  ;;  %p1479_p7 = scmp.lt.s32.totalorder %s1906_s13, %s1477_s8 }
  0x70   : > { %1191 = vmatprep.subr.bf16.mxu0 %v1356_v2  ;;  %v1367_v19 = vld [vmem:[%s1767_s9 + $0x28] sm:$0xff]   ;;  %v1369_v21 = vld [vmem:[%s1767_s9 + $0x38] sm:$0xff]   ;;  %v1370_v22 = vld [vmem:[%s1767_s9 + $0x40] sm:$0xff]  }
  0x71   : > { %v1371_v23 = vld [vmem:[%s1767_s9 + $0x48] sm:$0xff]   ;;  %v1372_v24 = vld [vmem:[%s1767_s9 + $0x50] sm:$0xff]   ;;  %v1373_v25 = vld [vmem:[%s1767_s9 + $0x58] sm:$0xff]   ;;  %p1475_p3 = pneg %p1474_p2 }
  0x72   : > { %1238 = vmatpush3.bf16.msra.mxu1 %v1379_v10  ;;  %v1374_v26 = vld [vmem:[%s1767_s9 + $0x60] sm:$0xff]   ;;  %v1375_v27 = vld [vmem:[%s1767_s9 + $0x68] sm:$0xff]   ;;  %v1376_v28 = vld [vmem:[%s1767_s9 + $0x70] sm:$0xff]  }
  0x73   : > { %1192 = vmatpush3.bf16.msra.mxu0 %v1356_v2  ;;  %1239 = vmatprep.subr.bf16.mxu1 %v1380_v11  ;;  %v1377_v29 = vld [vmem:[%s1767_s9 + $0x78] sm:$0xff]   ;;  %v1384_v30 = vld [vmem:[#allocation7 + $0x30] sm:$0xff]   ;;  %v1796_v32 = vld [vmem:[%s1955_s2] ss:$0 sm:$0xff]  ;;  %s1478_s9 = scalar_lea.vmem %s1477_s8, 8192 }
  0x74   : > { %1193 = vmatprep.subr.bf16.mxu0 %v1357_v3  ;;  %v1385_v31 = vld [vmem:[#allocation7 + $0x38] sm:$0xff]   ;;  %p1480_p9 = scmp.lt.s32.totalorder %s1478_s9, %s1472_s7 }
  0x76   : > { %1240 = vmatpush3.bf16.msra.mxu1 %v1380_v11  ;;  %p1481_p12 = por %p1480_p9, %p1479_p7 }
  0x77   : > { %1194 = vmatpush3.bf16.msra.mxu0 %v1357_v3  ;;  %1241 = vmatprep.subr.bf16.mxu1 %v1381_v14 }
  0x78   : > { %1195 = vmatprep.subr.bf16.mxu0 %v1358_v5  ;;  %p1482_p1 = pnand %p1481_p12, %p1475_p3 }
  0x7a   : > { %1242 = vmatpush3.bf16.msra.mxu1 %v1381_v14 }
  0x7b   : > { %1196 = vmatpush3.bf16.msra.mxu0 %v1358_v5  ;;  %1243 = vmatprep.subr.bf16.mxu1 %v1382_v15 }
  0x7c   : > { %1197 = vmatprep.subr.bf16.mxu0 %v1359_v6 }
  0x7e   : > { %1244 = vmatpush3.bf16.msra.mxu1 %v1382_v15 }
  0x7f   : > { %1198 = vmatpush3.bf16.msra.mxu0 %v1359_v6  ;;  %1245 = vmatprep.subr.bf16.mxu1 %v1383_v18 }
  0x80   : > { %1199 = vmatprep.subr.bf16.mxu0 %v1360_v7 }
  0x82   : > { %1246 = vmatpush3.bf16.msra.mxu1 %v1383_v18 }
  0x83   : > { %1200 = vmatpush3.bf16.msra.mxu0 %v1360_v7  ;;  %1247 = vmatprep.subr.bf16.mxu1 %v1384_v30 }
  0x84   : > { %1201 = vmatprep.subr.bf16.mxu0 %v1361_v8 }
  0x86   : > { %1248 = vmatpush3.bf16.msra.mxu1 %v1384_v30 }
  0x87   : > { %1202 = vmatpush3.bf16.msra.mxu0 %v1361_v8  ;;  %1249 = vmatprep.subr.bf16.mxu1 %v1385_v31 }
  0x8a   : > { %1204 = vmatmul.mubr.bf16.vlgmr.msra.gmra.mrb[0].mxu0 %v1363_v12  ;;  %1250 = vmatpush3.bf16.msra.mxu1 %v1385_v31 }
  0x8b   : > { %1207 = vmatprep.mubr.bf16.mxu0 %v1364_v13 }
  0x92   : > { %1208 = vmatmul.mubr.bf16.gmra.mrb[4].mxu0 %v1365_v16 }
  0x93   : > { %1211 = vmatprep.mubr.bf16.mxu0 %v1366_v17 }
  0x9a   : > { %1212 = vmatmul.mubr.bf16.gmra.mrb[8].mxu0 %v1367_v19 }
  0x9b   : > { %1215 = vmatprep.mubr.bf16.mxu0 %v1368_v20 }
  0xa2   : > { %1216 = vmatmul.mubr.bf16.gmra.mrb[12].mxu0 %v1369_v21 }
  0xa3   : > { %1219 = vmatprep.mubr.bf16.mxu0 %v1370_v22 }
  0xaa   : > { %1220 = vmatmul.mubr.bf16.gmra.mrb[16].mxu0 %v1371_v23 }
  0xab   : > { %1223 = vmatprep.mubr.bf16.mxu0 %v1372_v24 }
  0xb2   : > { %1224 = vmatmul.mubr.bf16.gmra.mrb[20].mxu0 %v1373_v25 }
  0xb3   : > { %1227 = vmatprep.mubr.bf16.mxu0 %v1374_v26 }
  0xba   : > { %1228 = vmatmul.mubr.bf16.gmra.mrb[24].mxu0 %v1375_v27 }
  0xbb   : > { %1231 = vmatprep.mubr.bf16.mxu0 %v1376_v28 }
  0xc2   : > { %1232 = vmatmul.mubr.bf16.gmra.mrb[28].mxu0 %v1377_v29 }
 0x15d   : > { %v1205_v33 = vpop.f32.mrb[0].mxu0 }
 0x15e   : > { %v517_v34 = vadd.f32 %v1205_v33, %v1796_v32  ;;  %v508_v35 = vpop.f32.mrb[1].mxu0 }
 0x15f   : > { %v509_v36 = vadd.f32 %v1796_v32, %v508_v35  ;;  %v1206_v37 = vpop.f32.mrb[2].mxu0 }
 0x160   : > { %v520_v38 = vadd.f32 %v1206_v37, %v1796_v32  ;;  %v511_v39 = vpop.f32.mrb[3].mxu0  ;;  %v637_v41 = vmax.f32 %v517_v34, 0.0 }
 0x161   : > { %v512_v40 = vadd.f32 %v1796_v32, %v511_v39  ;;  %v635_v43 = vmax.f32 %v509_v36, 0.0 }
 0x162   : > { %v638_v42 = vmax.f32 %v520_v38, 0.0 }
 0x163   : > { %v636_v44 = vmax.f32 %v512_v40, 0.0 }
 0x164   : > { %v668_v45 = vpack.c.bf16 %v638_v42, %v637_v41 }
 0x165   : > { %v1209_v46 = vpop.f32.mrb[4].mxu0  ;;  %v667_v47 = vpack.c.bf16 %v636_v44, %v635_v43 }
 0x166   : > { %v533_v48 = vadd.f32 %v1209_v46, %v1796_v32  ;;  %v524_v49 = vpop.f32.mrb[5].mxu0 }
 0x167   : > { %v525_v50 = vadd.f32 %v1796_v32, %v524_v49  ;;  %v1210_v51 = vpop.f32.mrb[6].mxu0  ;;  %1251 = vmatprep.mubr.bf16.mxu1 %v667_v47 }
 0x168   : > { %v536_v52 = vadd.f32 %v1210_v51, %v1796_v32  ;;  %v527_v53 = vpop.f32.mrb[7].mxu0  ;;  %1252 = vmatmul.mubr.bf16.vlgmr.msra.gmra.mrb[0].mxu1 %v668_v45  ;;  %v641_v55 = vmax.f32 %v533_v48, 0.0 }
 0x169   : > { %v528_v54 = vadd.f32 %v1796_v32, %v527_v53  ;;  %v639_v57 = vmax.f32 %v525_v50, 0.0 }
 0x16a   : > { %v642_v56 = vmax.f32 %v536_v52, 0.0 }
 0x16b   : > { %v640_v58 = vmax.f32 %v528_v54, 0.0 }
 0x16c   : > { %v670_v59 = vpack.c.bf16 %v642_v56, %v641_v55 }
 0x16d   : > { %v669_v60 = vpack.c.bf16 %v640_v58, %v639_v57  ;;  %v1213_v61 = vpop.f32.mrb[8].mxu0 }
 0x16e   : > { %v549_v62 = vadd.f32 %v1213_v61, %v1796_v32  ;;  %v540_v63 = vpop.f32.mrb[9].mxu0 }
 0x16f   : > { %v541_v0 = vadd.f32 %v1796_v32, %v540_v63  ;;  %v1214_v1 = vpop.f32.mrb[10].mxu0  ;;  %1255 = vmatprep.mubr.bf16.mxu1 %v669_v60 }
 0x170   : > { %v552_v2 = vadd.f32 %v1214_v1, %v1796_v32  ;;  %v543_v3 = vpop.f32.mrb[11].mxu0  ;;  %1256 = vmatmul.mubr.bf16.gmra.mrb[4].mxu1 %v670_v59  ;;  %v645_v5 = vmax.f32 %v549_v62, 0.0 }
 0x171   : > { %v544_v4 = vadd.f32 %v1796_v32, %v543_v3  ;;  %v643_v7 = vmax.f32 %v541_v0, 0.0 }
 0x172   : > { %v646_v6 = vmax.f32 %v552_v2, 0.0 }
 0x173   : > { %v644_v8 = vmax.f32 %v544_v4, 0.0 }
 0x174   : > { %v672_v9 = vpack.c.bf16 %v646_v6, %v645_v5 }
 0x175   : > { %v671_v10 = vpack.c.bf16 %v644_v8, %v643_v7  ;;  %v1217_v11 = vpop.f32.mrb[12].mxu0 }
 0x176   : > { %v565_v12 = vadd.f32 %v1217_v11, %v1796_v32  ;;  %v556_v13 = vpop.f32.mrb[13].mxu0 }
 0x177   : > { %v557_v14 = vadd.f32 %v1796_v32, %v556_v13  ;;  %v1218_v15 = vpop.f32.mrb[14].mxu0  ;;  %1259 = vmatprep.mubr.bf16.mxu1 %v671_v10 }
 0x178   : > { %v568_v16 = vadd.f32 %v1218_v15, %v1796_v32  ;;  %v559_v17 = vpop.f32.mrb[15].mxu0  ;;  %1260 = vmatmul.mubr.bf16.gmra.mrb[8].mxu1 %v672_v9  ;;  %v649_v19 = vmax.f32 %v565_v12, 0.0 }
 0x179   : > { %v560_v18 = vadd.f32 %v1796_v32, %v559_v17  ;;  %v647_v21 = vmax.f32 %v557_v14, 0.0 }
 0x17a   : > { %v650_v20 = vmax.f32 %v568_v16, 0.0 }
 0x17b   : > { %v648_v22 = vmax.f32 %v560_v18, 0.0  ;;  %v1833_v18 = vld [vmem:[%s1957_s4] ss:$0 sm:$0xff] }
 0x17c   : > { %v674_v23 = vpack.c.bf16 %v650_v20, %v649_v19 }
 0x17d   : > { %v673_v24 = vpack.c.bf16 %v648_v22, %v647_v21  ;;  %v1221_v25 = vpop.f32.mrb[16].mxu0 }
 0x17e   : > { %v581_v26 = vadd.f32 %v1221_v25, %v1796_v32  ;;  %v572_v27 = vpop.f32.mrb[17].mxu0 }
 0x17f   : > { %v573_v28 = vadd.f32 %v1796_v32, %v572_v27  ;;  %v1222_v29 = vpop.f32.mrb[18].mxu0  ;;  %1263 = vmatprep.mubr.bf16.mxu1 %v673_v24 }
 0x180   : > { %v584_v30 = vadd.f32 %v1222_v29, %v1796_v32  ;;  %v575_v31 = vpop.f32.mrb[19].mxu0  ;;  %1264 = vmatmul.mubr.bf16.gmra.mrb[12].mxu1 %v674_v23  ;;  %v653_v34 = vmax.f32 %v581_v26, 0.0 }
 0x181   : > { %v576_v33 = vadd.f32 %v1796_v32, %v575_v31  ;;  %v651_v36 = vmax.f32 %v573_v28, 0.0 }
 0x182   : > { %v654_v35 = vmax.f32 %v584_v30, 0.0 }
 0x183   : > { %v652_v37 = vmax.f32 %v576_v33, 0.0 }
 0x184   : > { %v676_v38 = vpack.c.bf16 %v654_v35, %v653_v34 }
 0x185   : > { %v675_v39 = vpack.c.bf16 %v652_v37, %v651_v36  ;;  %v1225_v40 = vpop.f32.mrb[20].mxu0 }
 0x186   : > { %v597_v41 = vadd.f32 %v1225_v40, %v1796_v32  ;;  %v588_v42 = vpop.f32.mrb[21].mxu0 }
 0x187   : > { %v589_v43 = vadd.f32 %v1796_v32, %v588_v42  ;;  %v1226_v44 = vpop.f32.mrb[22].mxu0  ;;  %1267 = vmatprep.mubr.bf16.mxu1 %v675_v39 }
 0x188   : > { %v600_v45 = vadd.f32 %v1226_v44, %v1796_v32  ;;  %v591_v46 = vpop.f32.mrb[23].mxu0  ;;  %1268 = vmatmul.mubr.bf16.gmra.mrb[16].mxu1 %v676_v38  ;;  %v657_v48 = vmax.f32 %v597_v41, 0.0 }
 0x189   : > { %v592_v47 = vadd.f32 %v1796_v32, %v591_v46  ;;  %v655_v50 = vmax.f32 %v589_v43, 0.0 }
 0x18a   : > { %v658_v49 = vmax.f32 %v600_v45, 0.0 }
 0x18b   : > { %v656_v51 = vmax.f32 %v592_v47, 0.0 }
 0x18c   : > { %v678_v52 = vpack.c.bf16 %v658_v49, %v657_v48 }
 0x18d   : > { %v677_v53 = vpack.c.bf16 %v656_v51, %v655_v50  ;;  %v1229_v54 = vpop.f32.mrb[24].mxu0 }
 0x18e   : > { %v613_v55 = vadd.f32 %v1229_v54, %v1796_v32  ;;  %v604_v56 = vpop.f32.mrb[25].mxu0 }
 0x18f   : > { %v605_v57 = vadd.f32 %v1796_v32, %v604_v56  ;;  %v1230_v58 = vpop.f32.mrb[26].mxu0  ;;  %1271 = vmatprep.mubr.bf16.mxu1 %v677_v53 }
 0x190   : > { %v616_v59 = vadd.f32 %v1230_v58, %v1796_v32  ;;  %v607_v60 = vpop.f32.mrb[27].mxu0  ;;  %1272 = vmatmul.mubr.bf16.gmra.mrb[20].mxu1 %v678_v52  ;;  %v661_v62 = vmax.f32 %v613_v55, 0.0 }
 0x191   : > { %v608_v61 = vadd.f32 %v1796_v32, %v607_v60  ;;  %v659_v0 = vmax.f32 %v605_v57, 0.0 }
 0x192   : > { %v662_v63 = vmax.f32 %v616_v59, 0.0 }
 0x193   : > { %v660_v1 = vmax.f32 %v608_v61, 0.0 }
 0x194   : > { %v680_v2 = vpack.c.bf16 %v662_v63, %v661_v62 }
 0x195   : > { %v679_v3 = vpack.c.bf16 %v660_v1, %v659_v0  ;;  %v1233_v4 = vpop.f32.mrb[28].mxu0 }
 0x196   : > { %v629_v5 = vadd.f32 %v1233_v4, %v1796_v32  ;;  %v620_v6 = vpop.f32.mrb[29].mxu0 }
 0x197   : > { %v621_v7 = vadd.f32 %v1796_v32, %v620_v6  ;;  %v1234_v8 = vpop.f32.mrb[30].mxu0  ;;  %1275 = vmatprep.mubr.bf16.mxu1 %v679_v3 }
 0x198   : > { %v632_v9 = vadd.f32 %v1234_v8, %v1796_v32  ;;  %v623_v10 = vpop.f32.mrb[31].mxu0  ;;  %1276 = vmatmul.mubr.bf16.gmra.mrb[24].mxu1 %v680_v2  ;;  %v665_v12 = vmax.f32 %v629_v5, 0.0 }
 0x199   : > { %v624_v11 = vadd.f32 %v1796_v32, %v623_v10  ;;  %v663_v14 = vmax.f32 %v621_v7, 0.0 }
 0x19a   : > { %v666_v13 = vmax.f32 %v632_v9, 0.0 }
 0x19b   : > { %v664_v15 = vmax.f32 %v624_v11, 0.0 }
 0x19c   : > { %v682_v16 = vpack.c.bf16 %v666_v13, %v665_v12 }
 0x19d   : > { %v681_v17 = vpack.c.bf16 %v664_v15, %v663_v14 }
 0x19f   : > { %1279 = vmatprep.mubr.bf16.mxu1 %v681_v17 }
 0x1a0   : > { %1280 = vmatmul.mubr.bf16.gmra.mrb[28].mxu1 %v682_v16 }
 0x23b   : > { %v1253_v19 = vpop.f32.mrb[0].mxu1 }
 0x23c   : > { %v797_v20 = vadd.f32 %v1253_v19, %v1833_v18  ;;  %v788_v21 = vpop.f32.mrb[1].mxu1 }
 0x23d   : > { %v789_v32 = vadd.f32 %v1833_v18, %v788_v21  ;;  %v1254_v22 = vpop.f32.mrb[2].mxu1 }
 0x23e   : > { %v917_v23 = vmax.f32 %v797_v20, 0.0  ;;  %v800_v24 = vadd.f32 %v1254_v22, %v1833_v18  ;;  %v791_v25 = vpop.f32.mrb[3].mxu1 }
 0x23f   : > { %v915_v26 = vmax.f32 %v789_v32, 0.0  ;;  %v792_v27 = vadd.f32 %v1833_v18, %v791_v25 }
 0x240   : > { %949 = vst [vmem:[%s1840_s28 + $0x10] sm:$0xff] %v917_v23  ;;  %v918_v28 = vmax.f32 %v800_v24, 0.0 }
 0x241   : > { %947 = vst [vmem:[%s1840_s28] sm:$0xff] %v915_v26  ;;  %v916_v29 = vmax.f32 %v792_v27, 0.0 }
 0x242   : > { %950 = vst [vmem:[%s1840_s28 + $0x18] sm:$0xff] %v918_v28 }
 0x243   : > { %948 = vst [vmem:[%s1840_s28 + $0x8] sm:$0xff] %v916_v29  ;;  %v1257_v30 = vpop.f32.mrb[4].mxu1 }
 0x244   : > { %v813_v31 = vadd.f32 %v1257_v30, %v1833_v18  ;;  %v804_v33 = vpop.f32.mrb[5].mxu1 }
 0x245   : > { %v805_v34 = vadd.f32 %v1833_v18, %v804_v33  ;;  %v1258_v35 = vpop.f32.mrb[6].mxu1 }
 0x246   : > { %v921_v36 = vmax.f32 %v813_v31, 0.0  ;;  %v816_v37 = vadd.f32 %v1258_v35, %v1833_v18  ;;  %v807_v38 = vpop.f32.mrb[7].mxu1 }
 0x247   : > { %v919_v39 = vmax.f32 %v805_v34, 0.0  ;;  %v808_v40 = vadd.f32 %v1833_v18, %v807_v38 }
 0x248   : > { %953 = vst [vmem:[%s1840_s28 + $0x30] sm:$0xff] %v921_v36  ;;  %v922_v41 = vmax.f32 %v816_v37, 0.0 }
 0x249   : > { %951 = vst [vmem:[%s1840_s28 + $0x20] sm:$0xff] %v919_v39  ;;  %v920_v42 = vmax.f32 %v808_v40, 0.0 }
 0x24a   : > { %954 = vst [vmem:[%s1840_s28 + $0x38] sm:$0xff] %v922_v41 }
 0x24b   : > { %952 = vst [vmem:[%s1840_s28 + $0x28] sm:$0xff] %v920_v42  ;;  %v1261_v43 = vpop.f32.mrb[8].mxu1 }
 0x24c   : > { %v829_v44 = vadd.f32 %v1261_v43, %v1833_v18  ;;  %v820_v45 = vpop.f32.mrb[9].mxu1 }
 0x24d   : > { %v821_v46 = vadd.f32 %v1833_v18, %v820_v45  ;;  %v1262_v47 = vpop.f32.mrb[10].mxu1 }
 0x24e   : > { %v925_v48 = vmax.f32 %v829_v44, 0.0  ;;  %v832_v49 = vadd.f32 %v1262_v47, %v1833_v18  ;;  %v823_v50 = vpop.f32.mrb[11].mxu1 }
 0x24f   : > { %v923_v51 = vmax.f32 %v821_v46, 0.0  ;;  %v824_v52 = vadd.f32 %v1833_v18, %v823_v50 }
 0x250   : > { %957 = vst [vmem:[%s1840_s28 + $0x50] sm:$0xff] %v925_v48  ;;  %v926_v53 = vmax.f32 %v832_v49, 0.0 }
 0x251   : > { %955 = vst [vmem:[%s1840_s28 + $0x40] sm:$0xff] %v923_v51  ;;  %v924_v54 = vmax.f32 %v824_v52, 0.0 }
 0x252   : > { %958 = vst [vmem:[%s1840_s28 + $0x58] sm:$0xff] %v926_v53 }
 0x253   : > { %956 = vst [vmem:[%s1840_s28 + $0x48] sm:$0xff] %v924_v54  ;;  %v1265_v55 = vpop.f32.mrb[12].mxu1 }
 0x254   : > { %v845_v56 = vadd.f32 %v1265_v55, %v1833_v18  ;;  %v836_v57 = vpop.f32.mrb[13].mxu1 }
 0x255   : > { %v837_v58 = vadd.f32 %v1833_v18, %v836_v57  ;;  %v1266_v59 = vpop.f32.mrb[14].mxu1 }
 0x256   : > { %v929_v60 = vmax.f32 %v845_v56, 0.0  ;;  %v848_v61 = vadd.f32 %v1266_v59, %v1833_v18  ;;  %v839_v62 = vpop.f32.mrb[15].mxu1 }
 0x257   : > { %v927_v63 = vmax.f32 %v837_v58, 0.0  ;;  %v840_v0 = vadd.f32 %v1833_v18, %v839_v62 }
 0x258   : > { %961 = vst [vmem:[%s1840_s28 + $0x70] sm:$0xff] %v929_v60  ;;  %v930_v1 = vmax.f32 %v848_v61, 0.0 }
 0x259   : > { %959 = vst [vmem:[%s1840_s28 + $0x60] sm:$0xff] %v927_v63  ;;  %v928_v2 = vmax.f32 %v840_v0, 0.0 }
 0x25a   : > { %962 = vst [vmem:[%s1840_s28 + $0x78] sm:$0xff] %v930_v1 }
 0x25b   : > { %960 = vst [vmem:[%s1840_s28 + $0x68] sm:$0xff] %v928_v2  ;;  %v1269_v3 = vpop.f32.mrb[16].mxu1 }
 0x25c   : > { %v861_v4 = vadd.f32 %v1269_v3, %v1833_v18  ;;  %v852_v5 = vpop.f32.mrb[17].mxu1 }
 0x25d   : > { %v853_v6 = vadd.f32 %v1833_v18, %v852_v5  ;;  %v1270_v7 = vpop.f32.mrb[18].mxu1 }
 0x25e   : > { %v933_v8 = vmax.f32 %v861_v4, 0.0  ;;  %v864_v9 = vadd.f32 %v1270_v7, %v1833_v18  ;;  %v855_v10 = vpop.f32.mrb[19].mxu1 }
 0x25f   : > { %v931_v11 = vmax.f32 %v853_v6, 0.0  ;;  %v856_v12 = vadd.f32 %v1833_v18, %v855_v10 }
 0x260   : > { %965 = vst [vmem:[%s1840_s28 + $0x90] sm:$0xff] %v933_v8  ;;  %v934_v13 = vmax.f32 %v864_v9, 0.0 }
 0x261   : > { %963 = vst [vmem:[%s1840_s28 + $0x80] sm:$0xff] %v931_v11  ;;  %v932_v14 = vmax.f32 %v856_v12, 0.0 }
 0x262   : > { %966 = vst [vmem:[%s1840_s28 + $0x98] sm:$0xff] %v934_v13 }
 0x263   : > { %964 = vst [vmem:[%s1840_s28 + $0x88] sm:$0xff] %v932_v14  ;;  %v1273_v15 = vpop.f32.mrb[20].mxu1 }
 0x264   : > { %v877_v16 = vadd.f32 %v1273_v15, %v1833_v18  ;;  %v868_v17 = vpop.f32.mrb[21].mxu1 }
 0x265   : > { %v869_v19 = vadd.f32 %v1833_v18, %v868_v17  ;;  %v1274_v20 = vpop.f32.mrb[22].mxu1 }
 0x266   : > { %v937_v21 = vmax.f32 %v877_v16, 0.0  ;;  %v880_v32 = vadd.f32 %v1274_v20, %v1833_v18  ;;  %v871_v22 = vpop.f32.mrb[23].mxu1 }
 0x267   : > { %v935_v23 = vmax.f32 %v869_v19, 0.0  ;;  %v872_v24 = vadd.f32 %v1833_v18, %v871_v22 }
 0x268   : > { %969 = vst [vmem:[%s1840_s28 + $0xb0] sm:$0xff] %v937_v21  ;;  %v938_v25 = vmax.f32 %v880_v32, 0.0 }
 0x269   : > { %967 = vst [vmem:[%s1840_s28 + $0xa0] sm:$0xff] %v935_v23  ;;  %v936_v26 = vmax.f32 %v872_v24, 0.0 }
 0x26a   : > { %970 = vst [vmem:[%s1840_s28 + $0xb8] sm:$0xff] %v938_v25 }
 0x26b   : > { %968 = vst [vmem:[%s1840_s28 + $0xa8] sm:$0xff] %v936_v26  ;;  %v1277_v27 = vpop.f32.mrb[24].mxu1 }
 0x26c   : > { %v893_v28 = vadd.f32 %v1277_v27, %v1833_v18  ;;  %v884_v29 = vpop.f32.mrb[25].mxu1 }
 0x26d   : > { %v885_v30 = vadd.f32 %v1833_v18, %v884_v29  ;;  %v1278_v31 = vpop.f32.mrb[26].mxu1 }
 0x26e   : > { %v941_v33 = vmax.f32 %v893_v28, 0.0  ;;  %v896_v34 = vadd.f32 %v1278_v31, %v1833_v18  ;;  %v887_v35 = vpop.f32.mrb[27].mxu1 }
 0x26f   : > { %v939_v36 = vmax.f32 %v885_v30, 0.0  ;;  %v888_v37 = vadd.f32 %v1833_v18, %v887_v35 }
 0x270   : > { %973 = vst [vmem:[%s1840_s28 + $0xd0] sm:$0xff] %v941_v33  ;;  %v942_v38 = vmax.f32 %v896_v34, 0.0 }
 0x271   : > { %971 = vst [vmem:[%s1840_s28 + $0xc0] sm:$0xff] %v939_v36  ;;  %v940_v39 = vmax.f32 %v888_v37, 0.0 }
 0x272   : > { %974 = vst [vmem:[%s1840_s28 + $0xd8] sm:$0xff] %v942_v38 }
 0x273   : > { %972 = vst [vmem:[%s1840_s28 + $0xc8] sm:$0xff] %v940_v39  ;;  %v1281_v40 = vpop.f32.mrb[28].mxu1 }
 0x274   : > { %v909_v41 = vadd.f32 %v1281_v40, %v1833_v18  ;;  %v900_v42 = vpop.f32.mrb[29].mxu1 }
 0x275   : > { %v901_v43 = vadd.f32 %v1833_v18, %v900_v42  ;;  %v1282_v44 = vpop.f32.mrb[30].mxu1 }
 0x276   : > { %v945_v45 = vmax.f32 %v909_v41, 0.0  ;;  %v912_v46 = vadd.f32 %v1282_v44, %v1833_v18  ;;  %v903_v47 = vpop.f32.mrb[31].mxu1 }
 0x277   : > { %v943_v48 = vmax.f32 %v901_v43, 0.0  ;;  %v904_v49 = vadd.f32 %v1833_v18, %v903_v47 }
 0x278   : > { %977 = vst [vmem:[%s1840_s28 + $0xf0] sm:$0xff] %v945_v45  ;;  %v946_v50 = vmax.f32 %v912_v46, 0.0 }
 0x279   : > { %975 = vst [vmem:[%s1840_s28 + $0xe0] sm:$0xff] %v943_v48  ;;  %v944_v51 = vmax.f32 %v904_v49, 0.0 }
 0x27a   : > { %978 = vst [vmem:[%s1840_s28 + $0xf8] sm:$0xff] %v946_v50 }
 0x27b   : > { %976 = vst [vmem:[%s1840_s28 + $0xe8] sm:$0xff] %v944_v51 }
 0x27c   : > { %1485 = shalt.err (!%p1482_p1)
}
 0x27d   : > { %s1486_s24 = scalar_lea.hbm %s1904_s17, 4096  ;;  %s1490_s16 = scalar_lea.hbm %s1958_s5, 8192 }
 0x27e   : > { %p1487_p13 = scmp.ne.s32.totalorder %s1904_s17, %s1486_s24  ;;  %p1491_p4 = scmp.lt.u32.totalorder %s1904_s17, %s1958_s5 }
 0x27f   : > { %p1492_p5 = scmp.lt.u32.totalorder %s1490_s16, %s1486_s24  ;;  %p1494_p11 = scmp.lt.u32.totalorder %s1486_s24, %s1904_s17 }
 0x280   : > { %p1488_p6 = pnand %p1487_p13, %p1972_p0 }
 0x281   : > { %p1493_p8 = por %p1492_p5, %p1491_p4 }
 0x282   : > { %p1489_p10 = pneg %p1488_p6 }
 0x283   : > { %p1495_p2 = por %p1494_p11, %p1493_p8 }
 0x285   : > { %p1496_p3 = pnand %p1495_p2, %p1489_p10 }
 0x287   : > { %1499 = shalt.err (!%p1496_p3)
}
 0x288   : > { %s1550_s12 = smov 128   ;;  %s1551_s30 = smov 8  }
 0x289   : > { %1293 = dma.vmem_to_hbm [thread:$0]  (%p1972_p0), %s1906_s13, 4096, %s1904_s17, %s980_s22, %s1550_s12, %s1550_s12, %s1551_s30  }
 0x28a PF: > { %s1008_s11 = sand.u32 1, %s1530_s18   ;;  %p1973_p7 = scmp.ne.s32.totalorder %s1963_s25, 0 }
 0x28b   : > { %p1974_p9 = scmp.ge.s32.totalorder %s1542_s21, 2  ;;  %s1009_s7 = scalar_lea.sflag [#allocation4], %s1008_s11 }
 0x28d   : > { %p1307_p12 = pnand %p1974_p9, %p1973_p7 }
 0x28f   : > { %1525 = dma.done.wait (!%p1307_p12), %s1009_s7, 4096  }
 0x290   : > { %1527 = vsyncadd (!%p1307_p12), %s1009_s7, 4294963200  ;;  %p19_p1 = scmp.ge.s32.totalorder %s1698_s29, 4   ;;  %s1975_s18 = smov %s1534_s19 }
 0x291   : > { %s1976_s19 = smov %s1538_s20  ;;  %s1977_s20 = smov %s1714_s27 }
 0x292   : > { %s1978_s21 = smov %s1698_s29  ;;  %21 = sbr.rel (!%p19_p1) target bundleno = 6 (0x6), region = 93 }
 0x299   :  { %1014 = vsyncpa [#allocation3], 1 }
 0x29a   :  { %1016 = vsyncpa [#allocation3 + $0x1], 1 }
 0x29b   :  { %1017 = vsyncpa [#allocation6], 1 }
 0x29c   :  { %1018 = vsyncpa [#allocation4], 1 }
 0x29d   :  { %1020 = vsyncpa [#allocation4 + $0x1], 1 }

</bundles_post_ra>
